<compile_context>
chip_gen: v6e
topology: v6e:2x2x1
jax: 0.10.0
libtpu: 0.0.40
codegen_flags: <defaults>
</compile_context>

<pallas_src>
import functools

import jax
import jax.numpy as jnp
from jax import lax
from jax.experimental import pallas as pl
from jax.experimental.pallas import tpu as pltpu


def _cdiv(a, m):
    return (a + m - 1) // m


def _round_up(a, m):
    return _cdiv(a, m) * m


def _balanced_tile(n, quantum, cap):
    """Quantum-aligned tile <= cap whose grid covers n with <= one quantum of waste."""
    cap = max(quantum, (cap // quantum) * quantum)
    n_tiles = _cdiv(max(n, 1), cap)
    return min(cap, _round_up(_cdiv(n, n_tiles), quantum))


def _vmem_capacity_bytes(default=64 * 1024 * 1024):
    try:
        info = pltpu.get_tpu_info()
        cap = getattr(info, "vmem_capacity_bytes", None)
        if cap:
            return int(cap)
    except Exception:
        pass
    return default


def _lincomb_metric_kernel(w_ref, x_ref, y_ref, o_ref, acc_sq_ref, acc_ab_ref,
                           *, d, td, n_strips, mask_tail):
    """Fused L2+L1 linear-combination distance, one (tb, td) tile per grid step.

    Grid: (batch tiles, feature tiles); feature axis is the reduction (last).
      w_ref             : SMEM (2,)       weights [w_l2, w_l1]
      x_ref, y_ref      : VMEM (tb, td)   input tiles
      o_ref             : VMEM (tb, 1)    weighted distances (written at last k)
      acc_sq_ref        : VMEM (tb, 128)  lane-dense running sum of diff^2
      acc_ab_ref        : VMEM (tb, 128)  lane-dense running sum of |diff|
    """
    k = pl.program_id(1)
    last_k = pl.num_programs(1) - 1

    @pl.when(k == 0)
    def _init():
        acc_sq_ref[...] = jnp.zeros_like(acc_sq_ref)
        acc_ab_ref[...] = jnp.zeros_like(acc_ab_ref)

    def _accumulate(masked):
        diff = x_ref[...].astype(jnp.float32) - y_ref[...].astype(jnp.float32)
        if masked:
            # True global column index; zero out the out-of-range tail lanes so
            # the clamped-DMA garbage never enters the reduction.
            col = k * td + lax.broadcasted_iota(jnp.int32, (1, td), 1)
            diff = jnp.where(col < d, diff, 0.0)
        sq = diff * diff
        ab = jnp.abs(diff)
        # VALU-only per-step work: fold the td/128 lane strips together; the
        # cross-lane (XLU) reduce is deferred to the finalize branch.
        ssq = sq[:, 0:128]
        sab = ab[:, 0:128]
        for s in range(1, n_strips):
            lo = s * 128
            ssq = ssq + sq[:, lo:lo + 128]
            sab = sab + ab[:, lo:lo + 128]
        acc_sq_ref[...] += ssq
        acc_ab_ref[...] += sab

    if mask_tail:
        @pl.when(k == last_k)
        def _tail():
            _accumulate(True)

        @pl.when(k != last_k)
        def _body():
            _accumulate(False)
    else:
        _accumulate(False)

    @pl.when(k == last_k)
    def _finalize():
        # Single cross-lane reduce (XLU) + sqrt (EUP) per batch tile.
        ssq = jnp.sum(acc_sq_ref[...], axis=1, keepdims=True)
        sab = jnp.sum(acc_ab_ref[...], axis=1, keepdims=True)
        o_ref[...] = w_ref[0] * jnp.sqrt(ssq) + w_ref[1] * sab


def linear_combination_metric(x, y, weights=None, *, tb_max=1024, td_max=16384):
    """JAX wrapper reproducing LinearCombinationMetric.forward semantics.

    x, y    : (b, d) arrays, or (d,) vectors (promoted to (1, d) like the
              reference `_validate_inputs`).
    weights : optional length-2 sequence (or array) of positive weights for the
              concrete [L2, L1] sub-metrics; defaults to 1/num_metrics.
    Returns : (b,) float32 array of per-row weighted distances.
    """
    x = jnp.asarray(x)
    y = jnp.asarray(y)
    if x.ndim == 1 and y.ndim == 1:
        x = x[None, :]
        y = y[None, :]
    assert x.ndim == 2 and y.ndim == 2
    assert x.shape[0] == y.shape[0] and x.shape[1] == y.shape[1]
    if not jnp.issubdtype(x.dtype, jnp.floating):
        x = x.astype(jnp.float32)
    if not jnp.issubdtype(y.dtype, jnp.floating):
        y = y.astype(jnp.float32)
    if x.dtype != y.dtype:
        x = x.astype(jnp.float32)
        y = y.astype(jnp.float32)

    num_metrics = 2  # concrete sub-metrics: [L2, L1]
    if weights is None:
        weights = [1.0 / num_metrics] * num_metrics
    if isinstance(weights, (list, tuple)):
        assert len(weights) == num_metrics
        for wv in weights:
            if isinstance(wv, (int, float)):
                assert float(wv) > 0.0
    w_arr = jnp.asarray(weights, dtype=jnp.float32).reshape(num_metrics)

    b, d = x.shape
    itemsize = x.dtype.itemsize

    # ---- generation-aware VMEM budget -------------------------------------
    vmem_cap = _vmem_capacity_bytes()                     # 64 MiB/TC v7x, 128 MiB v5e/v6e
    vmem_limit = min((vmem_cap * 3) // 4, 96 * 1024 * 1024)

    # ---- batch tile: packing-aligned, balanced, >=2 tiles for v7x megacore --
    row_q = max(8, 32 // itemsize)                        # f32:8, bf16:16, int8/fp8:32
    tb_cap = tb_max
    if b >= 2 * row_q:
        tb_cap = min(tb_cap, _round_up(_cdiv(b, 2), row_q))
    tb = _balanced_tile(b, row_q, tb_cap)

    # ---- feature tile: byte-budgeted, balanced, lane-aligned ----------------
    target_tile_bytes = 4 * 1024 * 1024                   # >= ~4 MiB per input tile/step
    scratch_bytes = 2 * tb * 128 * 4
    headroom = 2 * 1024 * 1024
    input_budget = max(vmem_limit - scratch_bytes - headroom, 4 * tb * 128 * itemsize)
    td_vmem_cap = input_budget // (4 * tb * itemsize)     # 2 inputs x 2 buffers
    td_target = max(target_tile_bytes // (tb * itemsize), 128)
    td_cap = max(128, (min(td_vmem_cap, td_target, td_max) // 128) * 128)
    td = _balanced_tile(d, 128, td_cap)

    grid = (_cdiv(b, tb), _cdiv(d, td))
    mask_tail = (d % td) != 0

    kernel = functools.partial(
        _lincomb_metric_kernel,
        d=d, td=td, n_strips=td // 128, mask_tail=mask_tail,
    )

    cost = pl.CostEstimate(
        flops=5 * b * d,                                   # sub, sq, abs, 2 accum adds
        transcendentals=b,                                 # sqrt per row
        bytes_accessed=2 * b * d * itemsize + b * 4 + num_metrics * 4,
    )

    out = pl.pallas_call(
        kernel,
        out_shape=jax.ShapeDtypeStruct((b, 1), jnp.float32),
        grid=grid,
        in_specs=[
            pl.BlockSpec(memory_space=pltpu.MemorySpace.SMEM),   # weights (2,)
            pl.BlockSpec((tb, td), lambda i, k: (i, k)),
            pl.BlockSpec((tb, td), lambda i, k: (i, k)),
        ],
        # Output block index constant along the reduction axis -> stays resident
        # in VMEM across all feature steps of a batch tile.
        out_specs=pl.BlockSpec((tb, 1), lambda i, k: (i, 0)),
        scratch_shapes=[
            pltpu.VMEM((tb, 128), jnp.float32),   # lane-dense sum(diff^2)
            pltpu.VMEM((tb, 128), jnp.float32),   # lane-dense sum(|diff|)
        ],
        compiler_params=pltpu.CompilerParams(
            dimension_semantics=("parallel", "arbitrary"),
            vmem_limit_bytes=int(vmem_limit),
        ),
        cost_estimate=cost,
    )(w_arr, x, y)

    # TODO(synk): update_metric (training-time estimation of sub-metrics) has
    # no forward-pass Pallas equivalent and is intentionally not implemented.
    return out[:, 0]


def _reference(x, y, weights):
    x = jnp.asarray(x, jnp.float32)
    y = jnp.asarray(y, jnp.float32)
    diff = x - y
    l2 = jnp.sqrt(jnp.sum(diff * diff, axis=1))
    l1 = jnp.sum(jnp.abs(diff), axis=1)
    return weights[0] * l2 + weights[1] * l1


if __name__ == "__main__":
    key = jax.random.PRNGKey(0)
    k1, k2, k3, k4, k5, k6, k7, k8 = jax.random.split(key, 8)

    # Case 1: small aligned-ish shape, default (uniform) weights.
    b, d = 8, 32
    x = jax.random.normal(k1, (b, d), dtype=jnp.float32)
    y = jax.random.normal(k2, (b, d), dtype=jnp.float32)
    dist = jax.block_until_ready(linear_combination_metric(x, y))
    ref = _reference(x, y, [0.5, 0.5])
    assert dist.shape == (b,)
    assert jnp.allclose(dist, ref, rtol=1e-4, atol=1e-4)

    # Case 2: unaligned shape (edge blocks + tail mask) + custom weights.
    b2, d2 = 5, 33
    x2 = jax.random.normal(k3, (b2, d2), dtype=jnp.float32)
    y2 = jax.random.normal(k4, (b2, d2), dtype=jnp.float32)
    w = [0.3, 0.7]
    dist2 = jax.block_until_ready(linear_combination_metric(x2, y2, w))
    ref2 = _reference(x2, y2, w)
    assert dist2.shape == (b2,)
    assert jnp.allclose(dist2, ref2, rtol=1e-4, atol=1e-4)

    # Case 3: force multi-tile batch + multi-step feature reduction with an
    # unaligned tail (small tile caps just to exercise the accumulation path).
    b3, d3 = 19, 300
    x3 = jax.random.normal(k5, (b3, d3), dtype=jnp.float32)
    y3 = jax.random.normal(k6, (b3, d3), dtype=jnp.float32)
    dist3 = jax.block_until_ready(
        linear_combination_metric(x3, y3, w, tb_max=8, td_max=128))
    ref3 = _reference(x3, y3, w)
    assert dist3.shape == (b3,)
    assert jnp.allclose(dist3, ref3, rtol=1e-4, atol=1e-4)

    # Case 4: bf16 inputs (packing-aware batch quantum), f32 math in-kernel.
    b4, d4 = 20, 40
    x4 = jax.random.normal(k7, (b4, d4), dtype=jnp.float32).astype(jnp.bfloat16)
    y4 = jax.random.normal(k8, (b4, d4), dtype=jnp.float32).astype(jnp.bfloat16)
    dist4 = jax.block_until_ready(linear_combination_metric(x4, y4, [0.25, 0.75]))
    ref4 = _reference(x4, y4, [0.25, 0.75])
    assert dist4.shape == (b4,)
    assert jnp.allclose(dist4, ref4, rtol=1e-4, atol=1e-4)

    print("KERNEL_OK")
</pallas_src>

<mosaic_0001>
module attributes {stable_mosaic.version = 11 : i64} {
  func.func @_lincomb_metric_kernel(%arg0: i32, %arg1: i32, %arg2: memref<2xf32, #tpu.memory_space<smem>>, %arg3: memref<8x128xf32, #tpu.memory_space<vmem>>, %arg4: memref<8x128xf32, #tpu.memory_space<vmem>>, %arg5: memref<8x1xf32, #tpu.memory_space<vmem>>, %arg6: memref<8x128xf32, #tpu.memory_space<vmem>>, %arg7: memref<8x128xf32, #tpu.memory_space<vmem>>) attributes {dimension_semantics = [#tpu.dimension_semantics<parallel>, #tpu.dimension_semantics<arbitrary>], iteration_bounds = array<i64: 1, 1>, scalar_prefetch = 0 : i64, scratch_operands = 2 : i64, tpu.core_type = #tpu.core_type<tc>, window_params = [{transform_indices = @transform_0, window_bounds = array<i64: 2>}, {transform_indices = @transform_1, window_bounds = array<i64: 8, 128>}, {transform_indices = @transform_2, window_bounds = array<i64: 8, 128>}, {transform_indices = @transform_3, window_bounds = array<i64: 8, 1>}]} {
    %c0_i32 = arith.constant 0 : i32
    %0 = arith.cmpi eq, %arg1, %c0_i32 : i32
    %1 = arith.extui %0 : i1 to i32
    %c0_i32_0 = arith.constant 0 : i32
    %2 = arith.cmpi ne, %1, %c0_i32_0 : i32
    scf.if %2 {
      %cst = arith.constant 0.000000e+00 : f32
      %12 = vector.broadcast %cst : f32 to vector<8x128xf32>
      %c0 = arith.constant 0 : index
      %c0_7 = arith.constant 0 : index
      %13 = vector.load %arg6[%c0, %c0_7] : memref<8x128xf32, #tpu.memory_space<vmem>>, vector<8x128xf32>
      tpu.vector_store %arg6[%c0, %c0_7], %12 {strides = array<i32>} : memref<8x128xf32, #tpu.memory_space<vmem>>, vector<8x128xf32>,
      %cst_8 = arith.constant 0.000000e+00 : f32
      %14 = vector.broadcast %cst_8 : f32 to vector<8x128xf32>
      %c0_9 = arith.constant 0 : index
      %c0_10 = arith.constant 0 : index
      %15 = vector.load %arg7[%c0_9, %c0_10] : memref<8x128xf32, #tpu.memory_space<vmem>>, vector<8x128xf32>
      tpu.vector_store %arg7[%c0_9, %c0_10], %14 {strides = array<i32>} : memref<8x128xf32, #tpu.memory_space<vmem>>, vector<8x128xf32>,
    } else {
    }
    %c0_i32_1 = arith.constant 0 : i32
    %3 = arith.cmpi eq, %arg1, %c0_i32_1 : i32
    %4 = arith.extui %3 : i1 to i32
    %c0_i32_2 = arith.constant 0 : i32
    %5 = arith.cmpi ne, %4, %c0_i32_2 : i32
    scf.if %5 {
      %c0 = arith.constant 0 : index
      %c0_7 = arith.constant 0 : index
      %12 = vector.load %arg3[%c0, %c0_7] : memref<8x128xf32, #tpu.memory_space<vmem>>, vector<8x128xf32>
      %c0_8 = arith.constant 0 : index
      %c0_9 = arith.constant 0 : index
      %13 = vector.load %arg4[%c0_8, %c0_9] : memref<8x128xf32, #tpu.memory_space<vmem>>, vector<8x128xf32>
      %14 = arith.subf %12, %13 : vector<8x128xf32>
      %c128_i32 = arith.constant 128 : i32
      %15 = arith.muli %arg1, %c128_i32 : i32
      %16 = tpu.iota {dimensions = array<i32: 1>} : vector<1x128xi32>
      %17 = vector.broadcast %15 : i32 to vector<1x128xi32>
      %18 = arith.addi %17, %16 : vector<1x128xi32>
      %c32_i32 = arith.constant 32 : i32
      %19 = vector.broadcast %c32_i32 : i32 to vector<1x128xi32>
      %20 = arith.cmpi slt, %18, %19 : vector<1x128xi32>
      %cst = arith.constant 0.000000e+00 : f32
      %21 = vector.shape_cast %20 : vector<1x128xi1> to vector<1x128xi1>
      %22 = vector.broadcast %21 : vector<1x128xi1> to vector<8x128xi1>
      %23 = vector.broadcast %cst : f32 to vector<8x128xf32>
      %24 = arith.select %22, %14, %23 : vector<8x128xi1>, vector<8x128xf32>
      %25 = arith.mulf %24, %24 : vector<8x128xf32>
      %26 = math.absf %24 : vector<8x128xf32>
      %c0_10 = arith.constant 0 : index
      %c0_11 = arith.constant 0 : index
      %27 = vector.load %arg6[%c0_10, %c0_11] : memref<8x128xf32, #tpu.memory_space<vmem>>, vector<8x128xf32>
      %28 = arith.addf %27, %25 : vector<8x128xf32>
      %c0_12 = arith.constant 0 : index
      %c0_13 = arith.constant 0 : index
      %29 = vector.load %arg6[%c0_12, %c0_13] : memref<8x128xf32, #tpu.memory_space<vmem>>, vector<8x128xf32>
      tpu.vector_store %arg6[%c0_12, %c0_13], %28 {strides = array<i32>} : memref<8x128xf32, #tpu.memory_space<vmem>>, vector<8x128xf32>,
      %c0_14 = arith.constant 0 : index
      %c0_15 = arith.constant 0 : index
      %30 = vector.load %arg7[%c0_14, %c0_15] : memref<8x128xf32, #tpu.memory_space<vmem>>, vector<8x128xf32>
      %31 = arith.addf %30, %26 : vector<8x128xf32>
      %c0_16 = arith.constant 0 : index
      %c0_17 = arith.constant 0 : index
      %32 = vector.load %arg7[%c0_16, %c0_17] : memref<8x128xf32, #tpu.memory_space<vmem>>, vector<8x128xf32>
      tpu.vector_store %arg7[%c0_16, %c0_17], %31 {strides = array<i32>} : memref<8x128xf32, #tpu.memory_space<vmem>>, vector<8x128xf32>,
    } else {
    }
    %c0_i32_3 = arith.constant 0 : i32
    %6 = arith.cmpi ne, %arg1, %c0_i32_3 : i32
    %7 = arith.extui %6 : i1 to i32
    %c0_i32_4 = arith.constant 0 : i32
    %8 = arith.cmpi ne, %7, %c0_i32_4 : i32
    scf.if %8 {
      %c0 = arith.constant 0 : index
      %c0_7 = arith.constant 0 : index
      %12 = vector.load %arg3[%c0, %c0_7] : memref<8x128xf32, #tpu.memory_space<vmem>>, vector<8x128xf32>
      %c0_8 = arith.constant 0 : index
      %c0_9 = arith.constant 0 : index
      %13 = vector.load %arg4[%c0_8, %c0_9] : memref<8x128xf32, #tpu.memory_space<vmem>>, vector<8x128xf32>
      %14 = arith.subf %12, %13 : vector<8x128xf32>
      %15 = arith.mulf %14, %14 : vector<8x128xf32>
      %16 = math.absf %14 : vector<8x128xf32>
      %c0_10 = arith.constant 0 : index
      %c0_11 = arith.constant 0 : index
      %17 = vector.load %arg6[%c0_10, %c0_11] : memref<8x128xf32, #tpu.memory_space<vmem>>, vector<8x128xf32>
      %18 = arith.addf %17, %15 : vector<8x128xf32>
      %c0_12 = arith.constant 0 : index
      %c0_13 = arith.constant 0 : index
      %19 = vector.load %arg6[%c0_12, %c0_13] : memref<8x128xf32, #tpu.memory_space<vmem>>, vector<8x128xf32>
      tpu.vector_store %arg6[%c0_12, %c0_13], %18 {strides = array<i32>} : memref<8x128xf32, #tpu.memory_space<vmem>>, vector<8x128xf32>,
      %c0_14 = arith.constant 0 : index
      %c0_15 = arith.constant 0 : index
      %20 = vector.load %arg7[%c0_14, %c0_15] : memref<8x128xf32, #tpu.memory_space<vmem>>, vector<8x128xf32>
      %21 = arith.addf %20, %16 : vector<8x128xf32>
      %c0_16 = arith.constant 0 : index
      %c0_17 = arith.constant 0 : index
      %22 = vector.load %arg7[%c0_16, %c0_17] : memref<8x128xf32, #tpu.memory_space<vmem>>, vector<8x128xf32>
      tpu.vector_store %arg7[%c0_16, %c0_17], %21 {strides = array<i32>} : memref<8x128xf32, #tpu.memory_space<vmem>>, vector<8x128xf32>,
    } else {
    }
    %c0_i32_5 = arith.constant 0 : i32
    %9 = arith.cmpi eq, %arg1, %c0_i32_5 : i32
    %10 = arith.extui %9 : i1 to i32
    %c0_i32_6 = arith.constant 0 : i32
    %11 = arith.cmpi ne, %10, %c0_i32_6 : i32
    scf.if %11 {
      %c0 = arith.constant 0 : index
      %c0_7 = arith.constant 0 : index
      %12 = vector.load %arg6[%c0, %c0_7] : memref<8x128xf32, #tpu.memory_space<vmem>>, vector<8x128xf32>
      %cst = arith.constant dense<0.000000e+00> : vector<8xf32>
      %13 = vector.multi_reduction <add>, %12, %cst [1] : vector<8x128xf32> to vector<8xf32>
      %14 = vector.shape_cast %13 : vector<8xf32> to vector<8x1xf32>
      %c0_8 = arith.constant 0 : index
      %c0_9 = arith.constant 0 : index
      %15 = vector.load %arg7[%c0_8, %c0_9] : memref<8x128xf32, #tpu.memory_space<vmem>>, vector<8x128xf32>
      %cst_10 = arith.constant dense<0.000000e+00> : vector<8xf32>
      %16 = vector.multi_reduction <add>, %15, %cst_10 [1] : vector<8x128xf32> to vector<8xf32>
      %17 = vector.shape_cast %16 : vector<8xf32> to vector<8x1xf32>
      %c0_11 = arith.constant 0 : index
      %18 = memref.load %arg2[%c0_11] : memref<2xf32, #tpu.memory_space<smem>>
      %19 = math.sqrt %14 : vector<8x1xf32>
      %20 = vector.broadcast %18 : f32 to vector<8x1xf32>
      %21 = arith.mulf %20, %19 : vector<8x1xf32>
      %c1 = arith.constant 1 : index
      %22 = memref.load %arg2[%c1] : memref<2xf32, #tpu.memory_space<smem>>
      %23 = vector.broadcast %22 : f32 to vector<8x1xf32>
      %24 = arith.mulf %23, %17 : vector<8x1xf32>
      %25 = arith.addf %21, %24 : vector<8x1xf32>
      %c0_12 = arith.constant 0 : index
      %c0_13 = arith.constant 0 : index
      %26 = vector.load %arg5[%c0_12, %c0_13] : memref<8x1xf32, #tpu.memory_space<vmem>>, vector<8x1xf32>
      tpu.vector_store %arg5[%c0_12, %c0_13], %25 {strides = array<i32>} : memref<8x1xf32, #tpu.memory_space<vmem>>, vector<8x1xf32>,
    } else {
    }
    return
  }
  func.func @transform_0(%arg0: i32, %arg1: i32) -> i32 {
    %c0_i32 = arith.constant 0 : i32
    %c0_i32_0 = arith.constant 0 : i32
    return %c0_i32 : i32
  }
  func.func @transform_1(%arg0: i32, %arg1: i32) -> (i32, i32) {
    %c0_i32 = arith.constant 0 : i32
    return %arg0, %arg1 : i32, i32
  }
  func.func @transform_2(%arg0: i32, %arg1: i32) -> (i32, i32) {
    %c0_i32 = arith.constant 0 : i32
    return %arg0, %arg1 : i32, i32
  }
  func.func @transform_3(%arg0: i32, %arg1: i32) -> (i32, i32) {
    %c0_i32 = arith.constant 0 : i32
    %c0_i32_0 = arith.constant 0 : i32
    return %arg0, %c0_i32 : i32, i32
  }
}

</mosaic_0001>

<bundles_post_ra>
// kernel: tpu_custom_call.1
= control target key start
LH: loop header
LB: loop body
LE: loop exit
PB: predicated region body
PF: predicated region fallthrough
CT: control target
= control target key end

     0   :  { %8 = vsyncpa [#allocation6], 0  ;;  %s217_s0 = inlined_call_operand.hbm [shape: f32[2], index: 0, kind: input, shape index: {}]   ;;  %s218_s1 = inlined_call_operand.hbm [shape: f32[8,32], index: 1, kind: input, shape index: {}]   ;;  %s219_s2 = inlined_call_operand.hbm [shape: f32[8,32], index: 2, kind: input, shape index: {}]   ;;  %s220_s3 = inlined_call_operand.vmem [shape: f32[8,1], index: 3, kind: output, shape index: {}]  }
   0x1   :  { %9 = vsyncpa [#allocation5], 0 }
   0x2   :  { %10 = vsyncpa [#allocation9], 0  ;;  %s182_s12 = smov [#allocation4]   ;;  %s183_s15 = smov [#allocation7]  }
   0x3   :  { %18 = dma.hbm_to_smem %s217_s0, 16, %s182_s12, [#allocation6]  }
   0x4   :  { %s25_s16 = sshll.u32 %s183_s15, 4  ;;  %s184_s17 = smov [#allocation8]   ;;  %s26_s16 = int_to_ptr.vmem [resolvable:$true] %s25_s16 }
   0x5   :  { %s35_s18 = sshll.u32 %s184_s17, 4  ;;  %s144_s19 = scalar_lea.vmem %s26_s16, 128  ;;  %s36_s18 = int_to_ptr.vmem [resolvable:$true] %s35_s18 }
   0x6   :  { %p145_p0 = scmp.ne.s32.totalorder %s26_s16, %s144_s19  ;;  %p149_p1 = scmp.lt.s32.totalorder %s26_s16, %s26_s16 }
   0x7   :  { %p150_p2 = scmp.lt.s32.totalorder %s144_s19, %s144_s19 }
   0x9   :  { %p151_p3 = por %p150_p2, %p149_p1 }
   0xb   :  { %p152_p4 = pnand %p151_p3, %p145_p0 }
   0xd   :  { %155 = shalt.err (!%p152_p4)
}
   0xe   :  { %28 = dma.hbm_to_vmem [thread:$0]  %s218_s1, 128, %s26_s16, [#allocation5]  }
   0xf   :  { %s164_s22 = scalar_lea.vmem %s36_s18, 128  ;;  %p169_p6 = scmp.lt.s32.totalorder %s36_s18, %s36_s18 }
  0x10   :  { %p165_p5 = scmp.ne.s32.totalorder %s36_s18, %s164_s22  ;;  %p170_p7 = scmp.lt.s32.totalorder %s164_s22, %s164_s22 }
  0x12   :  { %p171_p8 = por %p170_p7, %p169_p6 }
  0x14   :  { %p172_p9 = pnand %p171_p8, %p165_p5 }
  0x16   :  { %175 = shalt.err (!%p172_p9)
}
  0x17   :  { %38 = dma.hbm_to_vmem [thread:$0]  %s219_s2, 128, %s36_s18, [#allocation9]  }
  0x18   :  { %176 = dma.done.wait [#allocation6], 16  }
  0x19   :  { %177 = vsyncadd [#allocation6], 4294967280 }
  0x1a   :  { %178 = dma.done.wait [#allocation5], 128  }
  0x1b   :  { %179 = vsyncadd [#allocation5], 4294967168 }
  0x1c   :  { %180 = dma.done.wait [#allocation9], 128  }
  0x1d   :  { %181 = vsyncadd [#allocation9], 4294967168 }
  0x1e   :  { %48 = sfence }
  0x1f   :  { %v55_v0 = vld [vmem:[#allocation7] sm:$0xff]  ;;  %v56_v1 = vld [vmem:[#allocation8] sm:$0xff]  ;;  %v59_v2 = vlaneseq  ;;  %s122_s1 = sld [smem:[#allocation4 + $0x1]]  ;;  %vm113_vm3 = vcmask 7168  }
  0x20   :  { %v57_v3 = vsub.f32 %v55_v0, %v56_v1  ;;  %s99_s2 = sld [smem:[#allocation4]] }
  0x21   :  { %v60_v4 = vand.u32 127, %v59_v2 }
  0x23   :  { %vm63_vm0 = vcmp.lt.s32.totalorder %v60_v4, 32 }
  0x24   :  { %v66_v5 = vsel %vm63_vm0, %v57_v3, 0.0 }
  0x25   :  { %v67_v6 = vmul.f32 %v66_v5, %v66_v5  ;;  %v68_v7 = vand.u32 2147483647, %v66_v5  ;;  %v110_v10 = vstv %s122_s1 }
  0x26   :  { %v107_v14 = vstv %s99_s2 }
  0x27   :  { %94 = vadd.xlane.f32.xlu0 %v67_v6 }
  0x2b   :  { %97 = vadd.xlane.f32.xlu0 %v68_v7 }
  0xb0   :  { %v95_v8 = vpop.xlane.xlu0 %94 }
  0xb1   :  { %126 = vrsqrt.f32 %v95_v8  ;;  %vm102_vm1 = vcmp.eq.f32.partialorder %v95_v8, inf  ;;  %v105_v13 = vand.u32 2147483648, %v95_v8  ;;  %vm104_vm2 = vcmp.eq.f32.partialorder %v95_v8, 0.0 }
  0xb4   :  { %v98_v11 = vpop.xlane.xlu0 %97 }
  0xb5   :  { %v111_v16 = vmul.f32 %v110_v10, %v98_v11 }
  0xbe   :  { %v127_v9 = vpop.eup %126 }
  0xbf   :  { %v101_v12 = vmul.f32 %v127_v9, %v95_v8 }
  0xc1   :  { %v103_v15 = vsel %vm102_vm1, %v95_v8, %v101_v12 }
  0xc2   :  { %v106_v17 = vsel %vm104_vm2, %v105_v13, %v103_v15 }
  0xc3   :  { %v108_v18 = vmul.f32 %v107_v14, %v106_v17 }
  0xc5   :  { %v112_v19 = vadd.f32 %v111_v16, %v108_v18 }
  0xc7   :  { %114 = vst.msk [vmem:[%s220_s3] sm:$0xff] %vm113_vm3, %v112_v19 }
  0xc8   :  { %119 = vsyncpa [#allocation5], 1 }
  0xc9   :  { %120 = vsyncpa [#allocation9], 1 }
  0xca   :  { %121 = vsyncpa [#allocation6], 1 }

</bundles_post_ra>
